<compile_context>
chip_gen: v6e
topology: v6e:2x2x1
jax: 0.10.0
libtpu: 0.0.40
codegen_flags: <defaults>
</compile_context>

<pallas_src>
import numpy as np

import jax
import jax.numpy as jnp
from jax.experimental import pallas as pl
from jax.experimental.pallas import tpu as pltpu


def _identity_dma_kernel(x_hbm_ref, o_hbm_ref, sem):
    # Forward semantics of TaxiDriverClassifier.forward: return x unchanged.
    # Single full-array HBM->HBM DMA; no VMEM staging, no vector load/store.
    cp = pltpu.make_async_copy(x_hbm_ref, o_hbm_ref, sem)
    cp.start()
    cp.wait()


def taxi_driver_classifier_forward(x):
    """Pallas implementation of TaxiDriverClassifier.forward (identity)."""
    orig_shape = x.shape
    n = int(np.prod(orig_shape)) if x.ndim else 1
    if n == 0:
        return x

    # Rank-0 safety: give the DMA at least one dimension to walk.
    squeeze_back = False
    if x.ndim == 0:
        x = x.reshape(1)
        squeeze_back = True

    itemsize = jnp.dtype(x.dtype).itemsize

    out = pl.pallas_call(
        _identity_dma_kernel,
        out_shape=jax.ShapeDtypeStruct(x.shape, x.dtype),
        # Raw HBM refs on both sides: no BlockSpec tiling, no VMEM buffers.
        in_specs=[pl.BlockSpec(memory_space=pl.ANY)],
        out_specs=pl.BlockSpec(memory_space=pl.ANY),
        scratch_shapes=[pltpu.SemaphoreType.DMA(())],
        cost_estimate=pl.CostEstimate(
            flops=0, transcendentals=0, bytes_accessed=2 * n * itemsize
        ),
    )(x)

    if squeeze_back:
        out = out.reshape(orig_shape)
    return out


if __name__ == "__main__":
    # Deterministic small inputs consistent with a (batch, seq, input_dim)
    # trajectory classifier.
    key = jax.random.PRNGKey(0)
    batch, seq, input_dim = 2, 8, 32
    x = jax.random.normal(key, (batch, seq, input_dim), dtype=jnp.float32)

    # No parameters to initialize: the module's __init__ defines no layers.
    # TODO(synk): if the upstream project later adds real layers (LSTM/Linear),
    # initialize them here and fuse them into the kernel.

    x_host = np.asarray(jax.device_get(x))

    out = taxi_driver_classifier_forward(x)
    out = jax.block_until_ready(out)

    # Verify identity semantics exactly (no arithmetic is performed).
    assert out.shape == x.shape and out.dtype == x.dtype
    assert np.array_equal(np.asarray(jax.device_get(out)), x_host)

    # Extra sanity check: shapes whose element count is not a multiple of 128
    # (the old lane-layout fallback) now go through the same HBM->HBM DMA path.
    y = jax.random.normal(jax.random.PRNGKey(1), (3, 7, 5), dtype=jnp.float32)
    y_host = np.asarray(jax.device_get(y))
    out_y = jax.block_until_ready(taxi_driver_classifier_forward(y))
    assert np.array_equal(np.asarray(jax.device_get(out_y)), y_host)

    print("KERNEL_OK")
</pallas_src>

<mosaic_0001>
module attributes {stable_mosaic.version = 11 : i64} {
  func.func @_identity_dma_kernel(%arg0: memref<2x8x32xf32, #tpu.memory_space<any>>, %arg1: memref<2x8x32xf32, #tpu.memory_space<any>>, %arg2: memref<!tpu.dma_semaphore, #tpu.memory_space<semaphore_mem>>) attributes {dimension_semantics = [], scalar_prefetch = 0 : i64, scratch_operands = 1 : i64, tpu.core_type = #tpu.core_type<tc>} {
    tpu.enqueue_dma source(%arg0 : memref<2x8x32xf32, #tpu.memory_space<any>>) target(%arg1 : memref<2x8x32xf32, #tpu.memory_space<any>>) target_semaphore(%arg2 : memref<!tpu.dma_semaphore, #tpu.memory_space<semaphore_mem>>)
    tpu.wait_dma2 semaphore(%arg2 : memref<!tpu.dma_semaphore, #tpu.memory_space<semaphore_mem>>) src(%arg0 : memref<2x8x32xf32, #tpu.memory_space<any>>) dst(%arg1 : memref<2x8x32xf32, #tpu.memory_space<any>>)
    return
  }
}

</mosaic_0001>

<bundles_post_ra>
// kernel: tpu_custom_call.1
= control target key start
LH: loop header
LB: loop body
LE: loop exit
PB: predicated region body
PF: predicated region fallthrough
CT: control target
= control target key end

     0   :  { %s29_s6 = smov [#allocation2]   ;;  %s30_s7 = smov 131072   ;;  %s48_s0 = inlined_call_operand.hbm [shape: f32[2,8,32], index: 0, kind: input, shape index: {}]   ;;  %s49_s1 = inlined_call_operand.hbm [shape: f32[2,8,32], index: 1, kind: output, shape index: {}]  }
   0x1   :  { %s31_s8 = smov 0  }
   0x2   :  { %12 = dma.general %s48_s0, 256, %s49_s1, %s29_s6, %s30_s7, [#allocation4], %s31_s8, 0  }
   0x3   :  { %27 = dma.done.wait [#allocation2], 256 }
   0x4   :  { %28 = vsyncadd [#allocation2], 4294967040 }
   0x5   :  { %17 = vsyncmov [#allocation2] }
   0x8   :  { %s18_s13 = vpop.sfrf %17 }
   0x9   :  { %p23_p0 = scmp.ne.s32.totalorder %s18_s13, 0 }
   0xb   :  { %22 = shalt.err (%p23_p0)  }

</bundles_post_ra>
